<compile_context>
chip_gen: v5e
topology: v5e:2x2
jax: 0.10.0
libtpu: 0.0.40
codegen_flags: <defaults>
</compile_context>

<pallas_src>
import functools
import math

import jax
import jax.numpy as jnp
from jax.experimental import pallas as pl
from jax.experimental.pallas import tpu as pltpu

_MASK_VALUE = -1e30


def _pick_tile(dim, target, align):
    """Largest `align`-multiple tile <= target that divides dim (else full dim)."""
    if dim <= target:
        return dim
    t = (target // align) * align
    while t >= align:
        if dim % t == 0:
            return t
        t -= align
    return dim


# --------------------------------------------------------------------------
# Kernel 1: tiled matmul + bias (c_attn projection)
# --------------------------------------------------------------------------
def _linear_kernel(x_ref, w_ref, b_ref, o_ref, acc_ref):
    kk = pl.program_id(2)

    @pl.when(kk == 0)
    def _():
        acc_ref[...] = jnp.zeros(acc_ref.shape, jnp.float32)

    acc_ref[...] += jnp.dot(
        x_ref[...].astype(jnp.bfloat16),
        w_ref[...].astype(jnp.bfloat16),
        preferred_element_type=jnp.float32,
    )

    @pl.when(kk == pl.num_programs(2) - 1)
    def _():
        o_ref[...] = (acc_ref[...] + b_ref[...].astype(jnp.float32)).astype(o_ref.dtype)


def pallas_linear(x2d, w, b, tm_target=256, tn_target=256, tk_target=512):
    M, K = x2d.shape
    N = w.shape[1]
    tm = _pick_tile(M, tm_target, 8)
    tn = _pick_tile(N, tn_target, 128)
    tk = _pick_tile(K, tk_target, 128)
    grid = (M // tm, N // tn, K // tk)
    return pl.pallas_call(
        _linear_kernel,
        out_shape=jax.ShapeDtypeStruct((M, N), x2d.dtype),
        grid=grid,
        in_specs=[
            pl.BlockSpec((tm, tk), lambda i, j, k: (i, k)),
            pl.BlockSpec((tk, tn), lambda i, j, k: (k, j)),
            pl.BlockSpec((1, tn), lambda i, j, k: (0, j)),
        ],
        out_specs=pl.BlockSpec((tm, tn), lambda i, j, k: (i, j)),
        scratch_shapes=[pltpu.VMEM((tm, tn), jnp.float32)],
        compiler_params=pltpu.CompilerParams(
            dimension_semantics=("parallel", "parallel", "arbitrary")),
    )(x2d, w, b.reshape(1, N))


# --------------------------------------------------------------------------
# Kernel 2: flash-style causal attention, G heads per grid step, KV tiled
# --------------------------------------------------------------------------
def _flash_attn_kernel(q_ref, k_ref, v_ref, o_ref, m_sc, l_sc, acc_sc,
                       *, sm_scale, block_q, block_k):
    qi = pl.program_id(2)
    ki = pl.program_id(3)
    q_start = qi * block_q
    kv_start = ki * block_k

    @pl.when(ki == 0)
    def _():
        m_sc[...] = jnp.full(m_sc.shape, _MASK_VALUE, jnp.float32)
        l_sc[...] = jnp.zeros(l_sc.shape, jnp.float32)
        acc_sc[...] = jnp.zeros(acc_sc.shape, jnp.float32)

    # Skip KV tiles that are entirely above the causal diagonal for this Q tile.
    @pl.when(kv_start < q_start + block_q)
    def _():
        q = q_ref[0].astype(jnp.bfloat16)   # (G, tq, hd)
        k = k_ref[0].astype(jnp.bfloat16)   # (G, tk, hd)
        v = v_ref[0].astype(jnp.bfloat16)   # (G, tk, hd)

        # scores: contract head_dim, batch over the head group (no k.T copy)
        s = jax.lax.dot_general(
            q, k, (((2,), (2,)), ((0,), (0,))),
            preferred_element_type=jnp.float32) * sm_scale      # (G, tq, tk) f32

        row = q_start + jax.lax.broadcasted_iota(jnp.int32, s.shape, 1)
        col = kv_start + jax.lax.broadcasted_iota(jnp.int32, s.shape, 2)
        s = jnp.where(col <= row, s, _MASK_VALUE)

        m_prev = m_sc[...]
        m_new = jnp.maximum(m_prev, jnp.max(s, axis=-1, keepdims=True))
        alpha = jnp.exp(m_prev - m_new)
        p = jnp.exp(s - m_new)                                   # (G, tq, tk) f32
        l_sc[...] = alpha * l_sc[...] + jnp.sum(p, axis=-1, keepdims=True)
        pv = jax.lax.dot_general(
            p.astype(jnp.bfloat16), v, (((2,), (1,)), ((0,), (0,))),
            preferred_element_type=jnp.float32)                  # (G, tq, hd)
        acc_sc[...] = alpha * acc_sc[...] + pv
        m_sc[...] = m_new

    @pl.when(ki == pl.num_programs(3) - 1)
    def _():
        inv_l = pl.reciprocal(l_sc[...], approx=True)            # EUP, deferred norm
        o_ref[0] = (acc_sc[...] * inv_l).astype(o_ref.dtype)


def _pick_head_group(n_head, head_dim, lane=128):
    for g in range(1, n_head + 1):
        if n_head % g == 0 and g * head_dim >= lane:
            return g
    return n_head


def pallas_flash_attention(q, k, v, block_q_target=256, block_k_target=256):
    B, H, T, hd = q.shape
    sm_scale = 1.0 / math.sqrt(hd)
    G = _pick_head_group(H, hd)
    block_q = _pick_tile(T, block_q_target, 128)
    block_k = _pick_tile(T, block_k_target, 128)
    grid = (B, H // G, T // block_q, T // block_k)

    kern = functools.partial(_flash_attn_kernel, sm_scale=sm_scale,
                             block_q=block_q, block_k=block_k)
    q_spec = pl.BlockSpec((1, G, block_q, hd), lambda b, g, qi, ki: (b, g, qi, 0))
    kv_spec = pl.BlockSpec((1, G, block_k, hd), lambda b, g, qi, ki: (b, g, ki, 0))

    return pl.pallas_call(
        kern,
        out_shape=jax.ShapeDtypeStruct((B, H, T, hd), q.dtype),
        grid=grid,
        in_specs=[q_spec, kv_spec, kv_spec],
        out_specs=q_spec,
        scratch_shapes=[
            pltpu.VMEM((G, block_q, 1), jnp.float32),   # running max m
            pltpu.VMEM((G, block_q, 1), jnp.float32),   # running denom l
            pltpu.VMEM((G, block_q, hd), jnp.float32),  # output accumulator
        ],
        compiler_params=pltpu.CompilerParams(
            dimension_semantics=("parallel", "parallel", "parallel", "arbitrary")),
    )(q, k, v)


# --------------------------------------------------------------------------
# Kernel 3: c_proj consuming y directly in (B, H, T, hd) layout
# (head axis = reduction axis -> no transpose / HBM round-trip of y)
# --------------------------------------------------------------------------
def _proj_kernel(y_ref, w_ref, b_ref, o_ref, acc_ref):
    h = pl.program_id(3)

    @pl.when(h == 0)
    def _():
        acc_ref[...] = jnp.zeros(acc_ref.shape, jnp.float32)

    acc_ref[...] += jnp.dot(
        y_ref[0, 0].astype(jnp.bfloat16),      # (tmt, hd)
        w_ref[0].astype(jnp.bfloat16),         # (hd, tn)
        preferred_element_type=jnp.float32,
    )

    @pl.when(h == pl.num_programs(3) - 1)
    def _():
        o_ref[0] = (acc_ref[...] + b_ref[...].astype(jnp.float32)).astype(o_ref.dtype)


def pallas_head_proj(y, w_proj, b_proj, tm_target=256, tn_target=256):
    B, H, T, hd = y.shape
    N = w_proj.shape[1]
    tmt = _pick_tile(T, tm_target, 128)
    tn = _pick_tile(N, tn_target, 128)
    w3 = w_proj.reshape(H, hd, N)              # row h*hd+d of w_proj == w3[h, d, :]
    grid = (B, T // tmt, N // tn, H)
    return pl.pallas_call(
        _proj_kernel,
        out_shape=jax.ShapeDtypeStruct((B, T, N), y.dtype),
        grid=grid,
        in_specs=[
            pl.BlockSpec((1, 1, tmt, hd), lambda b, i, j, h: (b, h, i, 0)),
            pl.BlockSpec((1, hd, tn), lambda b, i, j, h: (h, 0, j)),
            pl.BlockSpec((1, tn), lambda b, i, j, h: (0, j)),
        ],
        out_specs=pl.BlockSpec((1, tmt, tn), lambda b, i, j, h: (b, i, j)),
        scratch_shapes=[pltpu.VMEM((tmt, tn), jnp.float32)],
        compiler_params=pltpu.CompilerParams(
            dimension_semantics=("parallel", "parallel", "parallel", "arbitrary")),
    )(y, w3, b_proj.reshape(1, N))


# --------------------------------------------------------------------------
# Module forward
# --------------------------------------------------------------------------
def causal_self_attention(x, params, n_head):
    B, T, C = x.shape
    hd = C // n_head
    w_attn, b_attn, w_proj, b_proj = params

    qkv = pallas_linear(x.reshape(B * T, C), w_attn, b_attn).reshape(B, T, 3 * C)

    # TODO(synk): the q/k/v head split could be fused into the attention
    # BlockSpec index_maps (offsets on the qkv last axis) when head_dim is a
    # multiple of 128; for smaller head_dim we keep these XLA transposes.
    q = qkv[..., :C].reshape(B, T, n_head, hd).transpose(0, 2, 1, 3)
    k = qkv[..., C:2 * C].reshape(B, T, n_head, hd).transpose(0, 2, 1, 3)
    v = qkv[..., 2 * C:].reshape(B, T, n_head, hd).transpose(0, 2, 1, 3)

    y = pallas_flash_attention(q, k, v)            # (B, H, T, hd)

    # c_proj reads y in (B, H, T, hd) layout directly: no transpose round-trip.
    out = pallas_head_proj(y, w_proj, b_proj)      # (B, T, C)
    return out


# --------------------------------------------------------------------------
# Pure-JAX (f32) reference for verification
# --------------------------------------------------------------------------
def reference_forward(x, params, n_head):
    B, T, C = x.shape
    hd = C // n_head
    w_attn, b_attn, w_proj, b_proj = params
    qkv = x @ w_attn + b_attn
    q = qkv[..., :C].reshape(B, T, n_head, hd).transpose(0, 2, 1, 3)
    k = qkv[..., C:2 * C].reshape(B, T, n_head, hd).transpose(0, 2, 1, 3)
    v = qkv[..., 2 * C:].reshape(B, T, n_head, hd).transpose(0, 2, 1, 3)
    s = jnp.einsum("bhqd,bhkd->bhqk", q, k) / math.sqrt(hd)
    mask = jnp.tril(jnp.ones((T, T), dtype=bool))
    s = jnp.where(mask[None, None], s, -jnp.inf)
    p = jax.nn.softmax(s, axis=-1)
    y = jnp.einsum("bhqk,bhkd->bhqd", p, v)
    y = y.transpose(0, 2, 1, 3).reshape(B, T, C)
    return y @ w_proj + b_proj


# --------------------------------------------------------------------------
# Deterministic parameter init (torch.nn.Linear default: U(-1/sqrt(in), +1/sqrt(in)))
# --------------------------------------------------------------------------
def init_params(key, n_embd):
    k1, k2, k3, k4 = jax.random.split(key, 4)
    bound = 1.0 / math.sqrt(n_embd)
    w_attn = jax.random.uniform(k1, (n_embd, 3 * n_embd), jnp.float32, -bound, bound)
    b_attn = jax.random.uniform(k2, (3 * n_embd,), jnp.float32, -bound, bound)
    w_proj = jax.random.uniform(k3, (n_embd, n_embd), jnp.float32, -bound, bound)
    b_proj = jax.random.uniform(k4, (n_embd,), jnp.float32, -bound, bound)
    return (w_attn, b_attn, w_proj, b_proj)


if __name__ == "__main__":
    B, T, C, n_head = 2, 8, 32, 4   # block_size=8, n_embd=32, n_head=4

    key = jax.random.PRNGKey(0)
    kx, kp = jax.random.split(key)
    x = jax.random.normal(kx, (B, T, C), dtype=jnp.float32)
    params = init_params(kp, C)

    out = causal_self_attention(x, params, n_head)
    out = jax.block_until_ready(out)

    ref = reference_forward(x, params, n_head)
    assert out.shape == (B, T, C)
    # bf16 MXU operands (f32 accumulation) => compare with bf16-level tolerance.
    assert jnp.allclose(out, ref, atol=2e-2, rtol=2e-2), "mismatch vs reference"

    print("KERNEL_OK")
</pallas_src>

<mosaic_0001>
module attributes {stable_mosaic.version = 11 : i64} {
  func.func @_linear_kernel(%arg0: i32, %arg1: i32, %arg2: i32, %arg3: memref<16x32xf32, #tpu.memory_space<vmem>>, %arg4: memref<32x96xf32, #tpu.memory_space<vmem>>, %arg5: memref<1x96xf32, #tpu.memory_space<vmem>>, %arg6: memref<16x96xf32, #tpu.memory_space<vmem>>, %arg7: memref<16x96xf32, #tpu.memory_space<vmem>>) attributes {dimension_semantics = [#tpu.dimension_semantics<parallel>, #tpu.dimension_semantics<parallel>, #tpu.dimension_semantics<arbitrary>], iteration_bounds = array<i64: 1, 1, 1>, scalar_prefetch = 0 : i64, scratch_operands = 1 : i64, tpu.core_type = #tpu.core_type<tc>, window_params = [{transform_indices = @transform_0, window_bounds = array<i64: 16, 32>}, {transform_indices = @transform_1, window_bounds = array<i64: 32, 96>}, {transform_indices = @transform_2, window_bounds = array<i64: 1, 96>}, {transform_indices = @transform_3, window_bounds = array<i64: 16, 96>}]} {
    %c0_i32 = arith.constant 0 : i32
    %0 = arith.cmpi eq, %arg2, %c0_i32 : i32
    %1 = arith.extui %0 : i1 to i32
    %c0_i32_0 = arith.constant 0 : i32
    %2 = arith.cmpi ne, %1, %c0_i32_0 : i32
    scf.if %2 {
      %cst_10 = arith.constant 0.000000e+00 : f32
      %14 = vector.broadcast %cst_10 : f32 to vector<16x96xf32>
      %c0_11 = arith.constant 0 : index
      %c0_12 = arith.constant 0 : index
      %15 = vector.load %arg7[%c0_11, %c0_12] : memref<16x96xf32, #tpu.memory_space<vmem>>, vector<16x96xf32>
      tpu.vector_store %arg7[%c0_11, %c0_12], %14 {strides = array<i32>} : memref<16x96xf32, #tpu.memory_space<vmem>>, vector<16x96xf32>,
    } else {
    }
    %c0 = arith.constant 0 : index
    %c0_1 = arith.constant 0 : index
    %3 = vector.load %arg7[%c0, %c0_1] : memref<16x96xf32, #tpu.memory_space<vmem>>, vector<16x96xf32>
    %c0_2 = arith.constant 0 : index
    %c0_3 = arith.constant 0 : index
    %4 = vector.load %arg3[%c0_2, %c0_3] : memref<16x32xf32, #tpu.memory_space<vmem>>, vector<16x32xf32>
    %5 = arith.truncf %4 : vector<16x32xf32> to vector<16x32xbf16>
    %c0_4 = arith.constant 0 : index
    %c0_5 = arith.constant 0 : index
    %6 = vector.load %arg4[%c0_4, %c0_5] : memref<32x96xf32, #tpu.memory_space<vmem>>, vector<32x96xf32>
    %7 = arith.truncf %6 : vector<32x96xf32> to vector<32x96xbf16>
    %cst = arith.constant dense<0.000000e+00> : vector<16x96xf32>
    %8 = tpu.matmul %5, %7, %cst {dimension_numbers = #tpu.dot_dimension_numbers<[1], [0], [0], [1], [0, 0, 1, 1], [], []>} : vector<16x32xbf16>, vector<32x96xbf16>, vector<16x96xf32> -> vector<16x96xf32>
    %9 = arith.addf %3, %8 : vector<16x96xf32>
    %c0_6 = arith.constant 0 : index
    %c0_7 = arith.constant 0 : index
    %10 = vector.load %arg7[%c0_6, %c0_7] : memref<16x96xf32, #tpu.memory_space<vmem>>, vector<16x96xf32>
    tpu.vector_store %arg7[%c0_6, %c0_7], %9 {strides = array<i32>} : memref<16x96xf32, #tpu.memory_space<vmem>>, vector<16x96xf32>,
    %c0_i32_8 = arith.constant 0 : i32
    %11 = arith.cmpi eq, %arg2, %c0_i32_8 : i32
    %12 = arith.extui %11 : i1 to i32
    %c0_i32_9 = arith.constant 0 : i32
    %13 = arith.cmpi ne, %12, %c0_i32_9 : i32
    scf.if %13 {
      %c0_10 = arith.constant 0 : index
      %c0_11 = arith.constant 0 : index
      %14 = vector.load %arg7[%c0_10, %c0_11] : memref<16x96xf32, #tpu.memory_space<vmem>>, vector<16x96xf32>
      %c0_12 = arith.constant 0 : index
      %c0_13 = arith.constant 0 : index
      %15 = vector.load %arg5[%c0_12, %c0_13] : memref<1x96xf32, #tpu.memory_space<vmem>>, vector<1x96xf32>
      %16 = vector.broadcast %15 : vector<1x96xf32> to vector<16x96xf32>
      %17 = arith.addf %14, %16 : vector<16x96xf32>
      %c0_14 = arith.constant 0 : index
      %c0_15 = arith.constant 0 : index
      %18 = vector.load %arg6[%c0_14, %c0_15] : memref<16x96xf32, #tpu.memory_space<vmem>>, vector<16x96xf32>
      tpu.vector_store %arg6[%c0_14, %c0_15], %17 {strides = array<i32>} : memref<16x96xf32, #tpu.memory_space<vmem>>, vector<16x96xf32>,
    } else {
    }
    return
  }
  func.func @transform_0(%arg0: i32, %arg1: i32, %arg2: i32) -> (i32, i32) {
    %c0_i32 = arith.constant 0 : i32
    return %arg0, %arg2 : i32, i32
  }
  func.func @transform_1(%arg0: i32, %arg1: i32, %arg2: i32) -> (i32, i32) {
    %c0_i32 = arith.constant 0 : i32
    return %arg2, %arg1 : i32, i32
  }
  func.func @transform_2(%arg0: i32, %arg1: i32, %arg2: i32) -> (i32, i32) {
    %c0_i32 = arith.constant 0 : i32
    %c0_i32_0 = arith.constant 0 : i32
    return %c0_i32, %arg1 : i32, i32
  }
  func.func @transform_3(%arg0: i32, %arg1: i32, %arg2: i32) -> (i32, i32) {
    %c0_i32 = arith.constant 0 : i32
    return %arg0, %arg1 : i32, i32
  }
}

</mosaic_0001>

<bundles_post_ra>
// kernel: tpu_custom_call.1
= control target key start
LH: loop header
LB: loop body
LE: loop exit
PB: predicated region body
PF: predicated region fallthrough
CT: control target
= control target key end

     0   :  { %8 = vsyncpa [#allocation4], 0  ;;  %s261_s0 = inlined_call_operand.hbm [shape: f32[16,32], index: 0, kind: input, shape index: {}]   ;;  %s262_s1 = inlined_call_operand.hbm [shape: f32[32,96], index: 1, kind: input, shape index: {}]   ;;  %s263_s2 = inlined_call_operand.vmem [shape: f32[1,96], index: 2, kind: input, shape index: {}]   ;;  %s264_s3 = inlined_call_operand.hbm [shape: f32[16,96], index: 3, kind: output, shape index: {}]  }
   0x1   :  { %9 = vsyncpa [#allocation7], 0 }
   0x2   :  { %10 = vsyncpa [#allocation5], 0  ;;  %s15_s14 = sshll.u32 %s261_s0, 4  ;;  %s208_s15 = smov [#allocation3]   ;;  %s16_s14 = int_to_ptr.hbm [resolvable:$true] %s15_s14 }
   0x3   :  { %s17_s16 = sshll.u32 %s208_s15, 4  ;;  %s28_s19 = sshll.u32 %s262_s1, 4  ;;  %s18_s16 = int_to_ptr.vmem [resolvable:$true] %s17_s16  ;;  %s29_s19 = int_to_ptr.hbm [resolvable:$true] %s28_s19 }
   0x4   :  { %s209_s20 = smov 128   ;;  %s210_s21 = smov 8  }
   0x5   :  { %23 = dma.hbm_to_vmem [thread:$0]  %s16_s14, 256, %s18_s16, [#allocation4], %s209_s20, %s209_s20, %s210_s21  }
   0x6   :  { %s211_s22 = smov [#allocation6]  }
   0x7   :  { %s30_s23 = sshll.u32 %s211_s22, 4  ;;  %s31_s23 = int_to_ptr.vmem [resolvable:$true] %s30_s23 }
   0x8   :  { %36 = dma.hbm_to_vmem [thread:$0]  %s29_s19, 512, %s31_s23, [#allocation7], %s209_s20, %s209_s20, %s210_s21  }
   0x9   :  { %202 = dma.done.wait [#allocation4], 256  }
   0xa   :  { %203 = vsyncadd [#allocation4], 4294967040 }
   0xb   :  { %204 = dma.done.wait [#allocation7], 512  }
   0xc   :  { %205 = vsyncadd [#allocation7], 4294966784  ;;  %vm52_vm0 = vcmask 785408   ;;  %v212_v0 = vmov 0.0   ;;  %v62_v1 = vld [vmem:[#allocation6 + $0x10] sm:$0xff]  ;;  %v63_v2 = vld [vmem:[#allocation6 + $0x18] sm:$0xff] }
   0xd   :  { %53 = vst.msk [vmem:[#allocation2] sm:$0xff] %vm52_vm0, %v212_v0  ;;  %v60_v3 = vld [vmem:[#allocation6] sm:$0xff]  ;;  %v65_v4 = vpack.c.bf16 %v63_v2, %v62_v1  ;;  %v61_v5 = vld [vmem:[#allocation6 + $0x8] sm:$0xff]  ;;  %v57_v7 = vld [vmem:[#allocation3] sm:$0xff]  ;;  %vm66_vm1 = vcmask 261120   ;;  %s213_s24 = smov [#allocation8]  }
   0xe   :  { %54 = vst.msk [vmem:[#allocation2 + $0x8] sm:$0xff] %vm52_vm0, %v212_v0  ;;  %v64_v6 = vpack.c.bf16 %v61_v5, %v60_v3  ;;  %v58_v8 = vld [vmem:[#allocation3 + $0x8] sm:$0xff]  ;;  %v129_v14 = vld [vmem:[%s263_s2] ss:$0 sm:$0xff]  ;;  %s106_s25 = sshll.u32 %s213_s24, 4  ;;  %s108_s28 = sshll.u32 %s264_s3, 4  ;;  %s107_s25 = int_to_ptr.vmem [resolvable:$true] %s106_s25  ;;  %s109_s28 = int_to_ptr.hbm [resolvable:$true] %s108_s28 }
   0xf   :  { %76 = vmatpush.bf16.msra.mxu0 %v65_v4  ;;  %v59_v9 = vpack.c.bf16 %v58_v8, %v57_v7 }
  0x13   :  { %77 = vmatpush.bf16.msra.mxu0 %v64_v6 }
  0x14   :  { %v55_v10 = vld [vmem:[#allocation2] sm:$0xff] }
  0x15   :  { %v56_v13 = vld [vmem:[#allocation2 + $0x8] sm:$0xff] }
  0x16   :  { %122 = vmatmul.msk.bf16.vlgmr.msra.gmra.mxu0 %vm66_vm1, %v59_v9 }
  0x93   :  { %v79_v11 = vpop.f32.mrf.mxu0 }
  0x94   :  { %v84_v12 = vadd.f32 %v79_v11, %v55_v10 }
  0x96   :  { %87 = vst.msk [vmem:[#allocation2] sm:$0xff] %vm52_vm0, %v84_v12 }
  0x9b   :  { %v81_v15 = vpop.f32.mrf.mxu0 }
  0x9c   :  { %v85_v16 = vadd.f32 %v81_v15, %v56_v13 }
  0x9d   :  { %v92_v17 = vld [vmem:[#allocation2] sm:$0xff] }
  0x9e   :  { %88 = vst.msk [vmem:[#allocation2 + $0x8] sm:$0xff] %vm52_vm0, %v85_v16  ;;  %v98_v18 = vadd.f32 %v129_v14, %v92_v17 }
  0xa0   :  { %100 = vst.msk [vmem:[#allocation8] sm:$0xff] %vm52_vm0, %v98_v18 }
  0xa5   :  { %v93_v19 = vld [vmem:[#allocation2 + $0x8] sm:$0xff] }
  0xa6   :  { %v99_v20 = vadd.f32 %v129_v14, %v93_v19 }
  0xa8   :  { %101 = vst.msk [vmem:[#allocation8 + $0x8] sm:$0xff] %vm52_vm0, %v99_v20 }
  0xa9   :  { %114 = dma.vmem_to_hbm [thread:$0]  %s107_s25, 256, %s109_s28, [#allocation5], %s209_s20, %s209_s20, %s210_s21  }
  0xaa   :  { %206 = dma.done.wait [#allocation5], 256  }
  0xab   :  { %207 = vsyncadd [#allocation5], 4294967040 }
  0xac   :  { %119 = vsyncpa [#allocation4], 1 }
  0xad   :  { %120 = vsyncpa [#allocation7], 1 }
  0xae   :  { %121 = vsyncpa [#allocation5], 1 }

</bundles_post_ra>
